<compile_context>
chip_gen: v7x
topology: tpu7x:2x2x1
jax: 0.10.0
libtpu: 0.0.40
codegen_flags: <defaults>
</compile_context>

<pallas_src>
import functools

import jax
import jax.numpy as jnp
from jax.experimental import pallas as pl
from jax.experimental.pallas import tpu as pltpu


def _round_up(x, m):
    return (x + m - 1) // m * m


def gin_fused_kernel(mx_ref, h0_ref, eagg_ref, w_ref, sp_ref, out_ref, *,
                     n_valid, num_layer, d_pad, h_pad):
    l = pl.program_id(0)

    # Seed the resident carry with the atom embeddings on the first layer.
    @pl.when(l == 0)
    def _():
        out_ref[...] = h0_ref[...]

    x = out_ref[...]                                          # [Np, Dp] f32

    # GIN 'add' aggregation with edge features:
    #   aggr[i] = sum_{e: dst(e)=i} (x[src(e)] + edge_emb[e])
    #           = Mx @ x + (precomputed per-dst segment-sum of edge embeddings)
    aggr = jnp.dot(mx_ref[...], x.astype(jnp.bfloat16),
                   preferred_element_type=jnp.float32) + eagg_ref[0]

    # Unpack per-layer parameters (static, tile-aligned slices).
    wpk = w_ref[0]                        # [Dp+Hp, Hp] bf16
    w1 = wpk[:d_pad, :]                   # [Dp, Hp]
    w2 = wpk[d_pad:, :d_pad]              # [Hp, Dp]
    sp = sp_ref[0]                        # [8, Hp] f32
    b1 = sp[0:1, :]                       # [1, Hp]
    b2 = sp[1:2, :d_pad]                  # [1, Dp]
    gamma = sp[2:3, :d_pad]               # [1, Dp]
    beta = sp[3:4, :d_pad]                # [1, Dp]

    # MLP: Linear(D -> 2D) -> ReLU -> Linear(2D -> D)  (bf16 MXU, f32 accum).
    h = jnp.dot(aggr.astype(jnp.bfloat16), w1,
                preferred_element_type=jnp.float32) + b1
    h = jnp.maximum(h, 0.0)
    h = jnp.dot(h.astype(jnp.bfloat16), w2,
                preferred_element_type=jnp.float32) + b2

    # BatchNorm1d: training-mode batch stats over valid node rows only
    # (biased variance, eps=1e-5).  Single pass: var = E[h^2] - mean^2.
    row_ids = jax.lax.broadcasted_iota(jnp.int32, (h.shape[0], 1), 0)
    mask = (row_ids < n_valid).astype(jnp.float32)            # [Np, 1]
    inv_n = jnp.float32(1.0 / n_valid)
    hm = h * mask
    mean = jnp.sum(hm, axis=0, keepdims=True) * inv_n
    var = jnp.maximum(
        jnp.sum(hm * h, axis=0, keepdims=True) * inv_n - mean * mean, 0.0)
    h = (h - mean) * jax.lax.rsqrt(var + 1e-5) * gamma + beta

    # F.relu for all but the last GNN layer (dropout with p=0 is identity).
    @pl.when(l < num_layer - 1)
    def _():
        out_ref[...] = jnp.maximum(h, 0.0).astype(out_ref.dtype)

    @pl.when(l == num_layer - 1)
    def _():
        out_ref[...] = h.astype(out_ref.dtype)


def xavier_uniform(key, shape):
    fan_in, fan_out = shape[0], shape[1]
    bound = (6.0 / (fan_in + fan_out)) ** 0.5
    return jax.random.uniform(key, shape, jnp.float32, -bound, bound)


def init_gin_params(key, num_layer, emb_dim):
    keys = jax.random.split(key, 2 + 8 * num_layer)
    params = {
        "x_emb1": xavier_uniform(keys[0], (120, emb_dim)),
        "x_emb2": xavier_uniform(keys[1], (3, emb_dim)),
        "layers": [],
    }
    for l in range(num_layer):
        k = keys[2 + 8 * l: 2 + 8 * (l + 1)]
        layer = {
            "edge_emb1": xavier_uniform(k[0], (5, emb_dim)),
            "edge_emb2": xavier_uniform(k[1], (3, emb_dim)),
            # nn.Linear(emb_dim, 2*emb_dim): stored pre-transposed as [in, out]
            "w1": xavier_uniform(k[2], (emb_dim, 2 * emb_dim)),
            "b1": 0.01 * jax.random.normal(k[3], (1, 2 * emb_dim), jnp.float32),
            # nn.Linear(2*emb_dim, emb_dim)
            "w2": xavier_uniform(k[4], (2 * emb_dim, emb_dim)),
            "b2": 0.01 * jax.random.normal(k[5], (1, emb_dim), jnp.float32),
            # BatchNorm1d affine params
            "gamma": jnp.ones((1, emb_dim), jnp.float32),
            "beta": jnp.zeros((1, emb_dim), jnp.float32),
        }
        params["layers"].append(layer)
    return params


@functools.partial(jax.jit, static_argnames=("num_layer", "emb_dim"))
def gin_forward(params, x_feat, edge_index, edge_attr, *, num_layer, emb_dim):
    n = x_feat.shape[0]
    d = emb_dim
    h_dim = 2 * d
    n_pad = max(_round_up(n, 128), 128)   # lane / MXU aligned node axis
    d_pad = _round_up(d, 128)
    h_pad = _round_up(h_dim, 128)         # h_pad >= d_pad always

    # ---- glue (embedding lookups / graph structure) in plain JAX ----
    # Atom embeddings: x_embedding1(x[:,0]) + x_embedding2(x[:,1])
    h0 = params["x_emb1"][x_feat[:, 0]] + params["x_emb2"][x_feat[:, 1]]
    h0 = jnp.zeros((n_pad, d_pad), jnp.float32).at[:n, :d].set(h0)

    # add_self_loops + self-loop edge_attr ([4, 0])
    arange_n = jnp.arange(n, dtype=edge_index.dtype)
    src = jnp.concatenate([edge_index[0], arange_n])
    dst = jnp.concatenate([edge_index[1], arange_n])
    self_loop_attr = jnp.zeros((n, 2), edge_attr.dtype).at[:, 0].set(4)
    ea = jnp.concatenate([edge_attr, self_loop_attr], axis=0)

    # Dense aggregation operator in bf16 (small integer counts -> exact).
    mx = (jnp.zeros((n_pad, n_pad), jnp.float32)
          .at[dst, src].add(1.0)).astype(jnp.bfloat16)

    # Per-layer packed operands: edge segment-sum, weights, small params.
    eaggs, w_packs, sp_packs = [], [], []
    for lp in params["layers"]:
        eemb = lp["edge_emb1"][ea[:, 0]] + lp["edge_emb2"][ea[:, 1]]
        eagg = jnp.zeros((n_pad, d), jnp.float32).at[dst].add(eemb)
        eaggs.append(jnp.pad(eagg, ((0, 0), (0, d_pad - d))))

        wp = jnp.zeros((d_pad + h_pad, h_pad), jnp.bfloat16)
        wp = wp.at[:d, :h_dim].set(lp["w1"].astype(jnp.bfloat16))
        wp = wp.at[d_pad:d_pad + h_dim, :d].set(lp["w2"].astype(jnp.bfloat16))
        w_packs.append(wp)

        sp = jnp.zeros((8, h_pad), jnp.float32)
        sp = sp.at[0, :h_dim].set(lp["b1"][0])
        sp = sp.at[1, :d].set(lp["b2"][0])
        sp = sp.at[2, :d].set(lp["gamma"][0])
        sp = sp.at[3, :d].set(lp["beta"][0])
        sp_packs.append(sp)

    eagg_s = jnp.stack(eaggs)    # [L, Np, Dp]     f32
    w_s = jnp.stack(w_packs)     # [L, Dp+Hp, Hp]  bf16
    sp_s = jnp.stack(sp_packs)   # [L, 8, Hp]      f32

    # ---- single fused pallas_call over the layer grid ----
    kernel = functools.partial(gin_fused_kernel, n_valid=n,
                               num_layer=num_layer, d_pad=d_pad, h_pad=h_pad)

    flops_per_layer = (2 * n_pad * n_pad * d_pad      # aggregation matmul
                       + 2 * n_pad * d_pad * h_pad    # MLP layer 1
                       + 2 * n_pad * h_pad * d_pad)   # MLP layer 2
    bytes_accessed = int(mx.size * 2 + h0.size * 4 + eagg_s.size * 4
                         + w_s.size * 2 + sp_s.size * 4 + n_pad * d_pad * 4)
    cost = pl.CostEstimate(flops=num_layer * flops_per_layer,
                           transcendentals=num_layer * d_pad,
                           bytes_accessed=bytes_accessed)

    # VMEM budget: double-buffered blocks + carry + slack; capped below v7x's
    # 64 MiB physical VMEM (harmless on v5e/v6e).
    block_bytes = (mx.size * 2 + h0.size * 4
                   + n_pad * d_pad * 4                 # eagg block
                   + (d_pad + h_pad) * h_pad * 2       # packed-weight block
                   + 8 * h_pad * 4                     # packed small params
                   + n_pad * d_pad * 4)                # output carry
    vmem_limit = int(min(48 * 1024 * 1024,
                         max(16 * 1024 * 1024, 4 * block_bytes)))

    out_pad = pl.pallas_call(
        kernel,
        out_shape=jax.ShapeDtypeStruct((n_pad, d_pad), jnp.float32),
        grid_spec=pltpu.PrefetchScalarGridSpec(
            num_scalar_prefetch=0,
            grid=(num_layer,),
            in_specs=[
                pl.BlockSpec((n_pad, n_pad), lambda l: (0, 0)),        # Mx (resident)
                pl.BlockSpec((n_pad, d_pad), lambda l: (0, 0)),        # h0 (resident)
                pl.BlockSpec((1, n_pad, d_pad), lambda l: (l, 0, 0)),  # edge aggr
                pl.BlockSpec((1, d_pad + h_pad, h_pad),
                             lambda l: (l, 0, 0)),                     # w1|w2 pack
                pl.BlockSpec((1, 8, h_pad), lambda l: (l, 0, 0)),      # b1,b2,g,b pack
            ],
            out_specs=pl.BlockSpec((n_pad, d_pad), lambda l: (0, 0)),  # resident carry
        ),
        input_output_aliases={1: 0},   # donate h0's HBM buffer to the output
        compiler_params=pltpu.CompilerParams(
            dimension_semantics=("arbitrary",),
            vmem_limit_bytes=vmem_limit,
        ),
        cost_estimate=cost,
    )(mx, h0, eagg_s, w_s, sp_s)

    return out_pad[:n, :d]


if __name__ == "__main__":
    num_layer = 3
    emb_dim = 32
    n_nodes = 8

    key = jax.random.PRNGKey(0)
    k_param, k_x1, k_x2, k_e1, k_e2 = jax.random.split(key, 5)

    params = init_gin_params(k_param, num_layer, emb_dim)

    # Node features: [N, 2] int (atom type in [0,120), chirality in [0,3))
    x_feat = jnp.stack(
        [jax.random.randint(k_x1, (n_nodes,), 0, 120),
         jax.random.randint(k_x2, (n_nodes,), 0, 3)], axis=1).astype(jnp.int32)

    # Ring graph: 8 undirected edges -> 16 directed edges. edge_index: [2, 16]
    u = jnp.arange(n_nodes, dtype=jnp.int32)
    v = (u + 1) % n_nodes
    edge_index = jnp.stack(
        [jnp.concatenate([u, v]), jnp.concatenate([v, u])], axis=0)

    # Edge attrs: [E, 2] int (bond type in [0,4), bond dir in [0,3))
    n_edges = edge_index.shape[1]
    edge_attr = jnp.stack(
        [jax.random.randint(k_e1, (n_edges,), 0, 4),
         jax.random.randint(k_e2, (n_edges,), 0, 3)], axis=1).astype(jnp.int32)

    out = gin_forward(params, x_feat, edge_index, edge_attr,
                      num_layer=num_layer, emb_dim=emb_dim)
    out = jax.block_until_ready(out)
    assert out.shape == (n_nodes, emb_dim) and out.dtype == jnp.float32
    assert bool(jnp.all(jnp.isfinite(out)))
    print("KERNEL_OK")
</pallas_src>

<mosaic_0001>
module attributes {stable_mosaic.version = 11 : i64} {
  func.func @gin_fused_kernel(%arg0: i32, %arg1: memref<128x128xbf16, #tpu.memory_space<vmem>>, %arg2: memref<128x128xf32, #tpu.memory_space<vmem>>, %arg3: memref<1x128x128xf32, #tpu.memory_space<vmem>>, %arg4: memref<1x256x128xbf16, #tpu.memory_space<vmem>>, %arg5: memref<1x8x128xf32, #tpu.memory_space<vmem>>, %arg6: memref<128x128xf32, #tpu.memory_space<vmem>>) attributes {dimension_semantics = [#tpu.dimension_semantics<arbitrary>], iteration_bounds = array<i64: 3>, scalar_prefetch = 0 : i64, scratch_operands = 0 : i64, tpu.core_type = #tpu.core_type<tc>, window_params = [{pipeline_mode = #tpu.pipeline_mode<synchronous>, transform_indices = @transform_0, window_bounds = array<i64: 128, 128>}, {pipeline_mode = #tpu.pipeline_mode<synchronous>, transform_indices = @transform_1, window_bounds = array<i64: 128, 128>}, {transform_indices = @transform_2, window_bounds = array<i64: 1, 128, 128>}, {transform_indices = @transform_3, window_bounds = array<i64: 1, 256, 128>}, {transform_indices = @transform_4, window_bounds = array<i64: 1, 8, 128>}, {pipeline_mode = #tpu.pipeline_mode<synchronous>, transform_indices = @transform_5, window_bounds = array<i64: 128, 128>}]} {
    %c0_i32 = arith.constant 0 : i32
    %0 = arith.cmpi eq, %arg0, %c0_i32 : i32
    %1 = arith.extui %0 : i1 to i32
    %c0_i32_0 = arith.constant 0 : i32
    %2 = arith.cmpi ne, %1, %c0_i32_0 : i32
    scf.if %2 {
      %c0_25 = arith.constant 0 : index
      %c0_26 = arith.constant 0 : index
      %67 = vector.load %arg2[%c0_25, %c0_26] : memref<128x128xf32, #tpu.memory_space<vmem>>, vector<128x128xf32>
      %c0_27 = arith.constant 0 : index
      %c0_28 = arith.constant 0 : index
      %68 = vector.load %arg6[%c0_27, %c0_28] : memref<128x128xf32, #tpu.memory_space<vmem>>, vector<128x128xf32>
      tpu.vector_store %arg6[%c0_27, %c0_28], %67 {strides = array<i32>} : memref<128x128xf32, #tpu.memory_space<vmem>>, vector<128x128xf32>,
    } else {
    }
    %c0 = arith.constant 0 : index
    %c0_1 = arith.constant 0 : index
    %3 = vector.load %arg6[%c0, %c0_1] : memref<128x128xf32, #tpu.memory_space<vmem>>, vector<128x128xf32>
    %c0_2 = arith.constant 0 : index
    %c0_3 = arith.constant 0 : index
    %4 = vector.load %arg1[%c0_2, %c0_3] : memref<128x128xbf16, #tpu.memory_space<vmem>>, vector<128x128xbf16>
    %5 = arith.truncf %3 : vector<128x128xf32> to vector<128x128xbf16>
    %cst = arith.constant dense<0.000000e+00> : vector<128x128xf32>
    %6 = tpu.matmul %4, %5, %cst {dimension_numbers = #tpu.dot_dimension_numbers<[1], [0], [0], [1], [0, 0, 1, 1], [], []>} : vector<128x128xbf16>, vector<128x128xbf16>, vector<128x128xf32> -> vector<128x128xf32>
    %c0_4 = arith.constant 0 : index
    %c0_5 = arith.constant 0 : index
    %c0_6 = arith.constant 0 : index
    %7 = vector.load %arg3[%c0_4, %c0_5, %c0_6] : memref<1x128x128xf32, #tpu.memory_space<vmem>>, vector<1x128x128xf32>
    %8 = vector.shape_cast %7 : vector<1x128x128xf32> to vector<128x128xf32>
    %9 = arith.addf %6, %8 : vector<128x128xf32>
    %c0_7 = arith.constant 0 : index
    %c0_8 = arith.constant 0 : index
    %c0_9 = arith.constant 0 : index
    %10 = vector.load %arg4[%c0_7, %c0_8, %c0_9] : memref<1x256x128xbf16, #tpu.memory_space<vmem>>, vector<1x256x128xbf16>
    %11 = vector.shape_cast %10 : vector<1x256x128xbf16> to vector<256x128xbf16>
    %12 = vector.extract_strided_slice %11 {offsets = [0, 0], sizes = [128, 128], strides = [1, 1]} : vector<256x128xbf16> to vector<128x128xbf16>
    %13 = vector.extract_strided_slice %11 {offsets = [128, 0], sizes = [128, 128], strides = [1, 1]} : vector<256x128xbf16> to vector<128x128xbf16>
    %c0_10 = arith.constant 0 : index
    %c0_11 = arith.constant 0 : index
    %c0_12 = arith.constant 0 : index
    %14 = vector.load %arg5[%c0_10, %c0_11, %c0_12] : memref<1x8x128xf32, #tpu.memory_space<vmem>>, vector<1x8x128xf32>
    %15 = vector.shape_cast %14 : vector<1x8x128xf32> to vector<8x128xf32>
    %16 = vector.extract_strided_slice %15 {offsets = [0, 0], sizes = [1, 128], strides = [1, 1]} : vector<8x128xf32> to vector<1x128xf32>
    %17 = vector.extract_strided_slice %15 {offsets = [1, 0], sizes = [1, 128], strides = [1, 1]} : vector<8x128xf32> to vector<1x128xf32>
    %18 = vector.extract_strided_slice %15 {offsets = [2, 0], sizes = [1, 128], strides = [1, 1]} : vector<8x128xf32> to vector<1x128xf32>
    %19 = vector.extract_strided_slice %15 {offsets = [3, 0], sizes = [1, 128], strides = [1, 1]} : vector<8x128xf32> to vector<1x128xf32>
    %20 = arith.truncf %9 : vector<128x128xf32> to vector<128x128xbf16>
    %cst_13 = arith.constant dense<0.000000e+00> : vector<128x128xf32>
    %21 = tpu.matmul %20, %12, %cst_13 {dimension_numbers = #tpu.dot_dimension_numbers<[1], [0], [0], [1], [0, 0, 1, 1], [], []>} : vector<128x128xbf16>, vector<128x128xbf16>, vector<128x128xf32> -> vector<128x128xf32>
    %22 = vector.broadcast %16 : vector<1x128xf32> to vector<128x128xf32>
    %23 = arith.addf %21, %22 : vector<128x128xf32>
    %cst_14 = arith.constant 0.000000e+00 : f32
    %24 = vector.broadcast %cst_14 : f32 to vector<128x128xf32>
    %25 = arith.maximumf %23, %24 : vector<128x128xf32>
    %26 = arith.truncf %25 : vector<128x128xf32> to vector<128x128xbf16>
    %cst_15 = arith.constant dense<0.000000e+00> : vector<128x128xf32>
    %27 = tpu.matmul %26, %13, %cst_15 {dimension_numbers = #tpu.dot_dimension_numbers<[1], [0], [0], [1], [0, 0, 1, 1], [], []>} : vector<128x128xbf16>, vector<128x128xbf16>, vector<128x128xf32> -> vector<128x128xf32>
    %28 = vector.broadcast %17 : vector<1x128xf32> to vector<128x128xf32>
    %29 = arith.addf %27, %28 : vector<128x128xf32>
    %30 = tpu.iota {dimensions = array<i32: 0>} : vector<128x1xi32>
    %c8_i32 = arith.constant 8 : i32
    %31 = vector.broadcast %c8_i32 : i32 to vector<128x1xi32>
    %32 = arith.cmpi slt, %30, %31 : vector<128x1xi32>
    %33 = arith.extui %32 : vector<128x1xi1> to vector<128x1xi32>
    %34 = arith.sitofp %33 : vector<128x1xi32> to vector<128x1xf32>
    %35 = vector.broadcast %34 : vector<128x1xf32> to vector<128x128xf32>
    %36 = arith.mulf %29, %35 : vector<128x128xf32>
    %cst_16 = arith.constant dense<0.000000e+00> : vector<128xf32>
    %37 = vector.multi_reduction <add>, %36, %cst_16 [0] : vector<128x128xf32> to vector<128xf32>
    %38 = vector.shape_cast %37 : vector<128xf32> to vector<1x128xf32>
    %cst_17 = arith.constant 1.250000e-01 : f32
    %39 = vector.broadcast %cst_17 : f32 to vector<1x128xf32>
    %40 = arith.mulf %38, %39 : vector<1x128xf32>
    %41 = arith.mulf %36, %29 : vector<128x128xf32>
    %cst_18 = arith.constant dense<0.000000e+00> : vector<128xf32>
    %42 = vector.multi_reduction <add>, %41, %cst_18 [0] : vector<128x128xf32> to vector<128xf32>
    %43 = vector.shape_cast %42 : vector<128xf32> to vector<1x128xf32>
    %cst_19 = arith.constant 1.250000e-01 : f32
    %44 = vector.broadcast %cst_19 : f32 to vector<1x128xf32>
    %45 = arith.mulf %43, %44 : vector<1x128xf32>
    %46 = arith.mulf %40, %40 : vector<1x128xf32>
    %47 = arith.subf %45, %46 : vector<1x128xf32>
    %cst_20 = arith.constant 0.000000e+00 : f32
    %48 = vector.broadcast %cst_20 : f32 to vector<1x128xf32>
    %49 = arith.maximumf %47, %48 : vector<1x128xf32>
    %50 = vector.broadcast %40 : vector<1x128xf32> to vector<128x128xf32>
    %51 = arith.subf %29, %50 : vector<128x128xf32>
    %cst_21 = arith.constant 9.99999974E-6 : f32
    %52 = vector.broadcast %cst_21 : f32 to vector<1x128xf32>
    %53 = arith.addf %49, %52 : vector<1x128xf32>
    %54 = math.rsqrt %53 : vector<1x128xf32>
    %55 = vector.broadcast %54 : vector<1x128xf32> to vector<128x128xf32>
    %56 = arith.mulf %51, %55 : vector<128x128xf32>
    %57 = vector.broadcast %18 : vector<1x128xf32> to vector<128x128xf32>
    %58 = arith.mulf %56, %57 : vector<128x128xf32>
    %59 = vector.broadcast %19 : vector<1x128xf32> to vector<128x128xf32>
    %60 = arith.addf %58, %59 : vector<128x128xf32>
    %c2_i32 = arith.constant 2 : i32
    %61 = arith.cmpi slt, %arg0, %c2_i32 : i32
    %62 = arith.extui %61 : i1 to i32
    %c0_i32_22 = arith.constant 0 : i32
    %63 = arith.cmpi ne, %62, %c0_i32_22 : i32
    scf.if %63 {
      %cst_25 = arith.constant 0.000000e+00 : f32
      %67 = vector.broadcast %cst_25 : f32 to vector<128x128xf32>
      %68 = arith.maximumf %60, %67 : vector<128x128xf32>
      %c0_26 = arith.constant 0 : index
      %c0_27 = arith.constant 0 : index
      %69 = vector.load %arg6[%c0_26, %c0_27] : memref<128x128xf32, #tpu.memory_space<vmem>>, vector<128x128xf32>
      tpu.vector_store %arg6[%c0_26, %c0_27], %68 {strides = array<i32>} : memref<128x128xf32, #tpu.memory_space<vmem>>, vector<128x128xf32>,
    } else {
    }
    %c2_i32_23 = arith.constant 2 : i32
    %64 = arith.cmpi eq, %arg0, %c2_i32_23 : i32
    %65 = arith.extui %64 : i1 to i32
    %c0_i32_24 = arith.constant 0 : i32
    %66 = arith.cmpi ne, %65, %c0_i32_24 : i32
    scf.if %66 {
      %c0_25 = arith.constant 0 : index
      %c0_26 = arith.constant 0 : index
      %67 = vector.load %arg6[%c0_25, %c0_26] : memref<128x128xf32, #tpu.memory_space<vmem>>, vector<128x128xf32>
      tpu.vector_store %arg6[%c0_25, %c0_26], %60 {strides = array<i32>} : memref<128x128xf32, #tpu.memory_space<vmem>>, vector<128x128xf32>,
    } else {
    }
    return
  }
  func.func @transform_0(%arg0: i32) -> (i32, i32) {
    %c0_i32 = arith.constant 0 : i32
    %c0_i32_0 = arith.constant 0 : i32
    %c0_i32_1 = arith.constant 0 : i32
    return %c0_i32, %c0_i32_0 : i32, i32
  }
  func.func @transform_1(%arg0: i32) -> (i32, i32) {
    %c0_i32 = arith.constant 0 : i32
    %c0_i32_0 = arith.constant 0 : i32
    %c0_i32_1 = arith.constant 0 : i32
    return %c0_i32, %c0_i32_0 : i32, i32
  }
  func.func @transform_2(%arg0: i32) -> (i32, i32, i32) {
    %c0_i32 = arith.constant 0 : i32
    %c0_i32_0 = arith.constant 0 : i32
    %c0_i32_1 = arith.constant 0 : i32
    return %arg0, %c0_i32, %c0_i32_0 : i32, i32, i32
  }
  func.func @transform_3(%arg0: i32) -> (i32, i32, i32) {
    %c0_i32 = arith.constant 0 : i32
    %c0_i32_0 = arith.constant 0 : i32
    %c0_i32_1 = arith.constant 0 : i32
    return %arg0, %c0_i32, %c0_i32_0 : i32, i32, i32
  }
  func.func @transform_4(%arg0: i32) -> (i32, i32, i32) {
    %c0_i32 = arith.constant 0 : i32
    %c0_i32_0 = arith.constant 0 : i32
    %c0_i32_1 = arith.constant 0 : i32
    return %arg0, %c0_i32, %c0_i32_0 : i32, i32, i32
  }
  func.func @transform_5(%arg0: i32) -> (i32, i32) {
    %c0_i32 = arith.constant 0 : i32
    %c0_i32_0 = arith.constant 0 : i32
    %c0_i32_1 = arith.constant 0 : i32
    return %c0_i32, %c0_i32_0 : i32, i32
  }
}

</mosaic_0001>

<bundles_post_ra>
// kernel: gin_forward.1
= control target key start
LH: loop header
LB: loop body
LE: loop exit
PB: predicated region body
PF: predicated region fallthrough
CT: control target
= control target key end

     0   :  { %s1446_s18 = smov 0   ;;  %s1899_s0 = inlined_call_operand.vmem [shape: bf16[128,128], index: 0, kind: input, shape index: {}]   ;;  %s1900_s1 = inlined_call_operand.vmem [shape: f32[128,128], index: 1, kind: input, shape index: {}, may-alias: {1,5}]   ;;  %s1901_s2 = inlined_call_operand.vmem [shape: f32[3,128,128], index: 2, kind: input, shape index: {}]   ;;  %s1902_s3 = inlined_call_operand.vmem [shape: bf16[3,256,128], index: 3, kind: input, shape index: {}]   ;;  %s1903_s4 = inlined_call_operand.vmem [shape: f32[3,8,128], index: 4, kind: input, shape index: {}]   ;;  %s1904_s5 = inlined_call_operand.vmem [shape: f32[128,128], index: 5, kind: output, shape index: {}, may-alias: {1,5}]  }
   0x1 LB: > { %s1452_s19 = sadd.s32 4294967295, %s1414_s18   ;;  %p1177_p0 = scmp.ge.s32.totalorder %s1414_s18, 1  ;;  %s1414_s18 = sphi %s1446_s18, %s15_s18  }
   0x2   : > { %p201_p1 = scmp.lt.s32.totalorder %s1414_s18, 4 }
   0x4   : > { %p202_p2 = pnand %p1177_p0, %p201_p1 }
   0x5   : > { %p233_p3 = scmp.lt.s32.totalorder (!%p202_p2), %s1452_s19, 2  ;;  %p1183_p4 = scmp.ne.s32.totalorder (!%p202_p2), %s1452_s19, 0 }
   0x6   : > { %205 = sbr.rel (%p202_p2) target bundleno = 852 (0x354), region = 40 }
   0xd   : > { %s234_s20 = scalar_select %p233_p3, %s1452_s19, 2 }
   0xe   : > { %251 = sbr.rel (%p1183_p4) target bundleno = 61 (0x3d), region = 44  ;;  %v252_v0 = vld [vmem:[%s1900_s1] sm:$0xff] (!%p1183_p4)  ;;  %v253_v1 = vld [vmem:[%s1900_s1 + $0x8] sm:$0xff] (!%p1183_p4)  ;;  %v254_v2 = vld [vmem:[%s1900_s1 + $0x10] sm:$0xff] (!%p1183_p4) }
   0xf   : > { %s1212_s21 = sshll.u32 %s234_s20, 7  ;;  %s1182_s22 = sshll.u32 %s234_s20, 3  ;;  %268 = vst [vmem:[%s1904_s5] sm:$0xff] (!%p1183_p4), %v252_v0  ;;  %269 = vst [vmem:[%s1904_s5 + $0x8] sm:$0xff] (!%p1183_p4), %v253_v1 }
  0x10   : > { %s1461_s25 = scalar_lea.vmem %s1901_s2, %s1212_s21  ;;  %s1466_s28 = scalar_lea.vmem %s1902_s3, %s1212_s21  ;;  %270 = vst [vmem:[%s1904_s5 + $0x10] sm:$0xff] (!%p1183_p4), %v254_v2 }
  0x11   : > { %s1471_s6 = scalar_lea.vmem %s1903_s4, %s1182_s22 }
  0x17   : > { %v255_v3 = vld [vmem:[%s1900_s1 + $0x18] sm:$0xff]  ;;  %v256_v4 = vld [vmem:[%s1900_s1 + $0x20] sm:$0xff]  ;;  %v257_v5 = vld [vmem:[%s1900_s1 + $0x28] sm:$0xff] }
  0x18   : > { %271 = vst [vmem:[%s1904_s5 + $0x18] sm:$0xff] %v255_v3  ;;  %272 = vst [vmem:[%s1904_s5 + $0x20] sm:$0xff] %v256_v4 }
  0x19   : > { %273 = vst [vmem:[%s1904_s5 + $0x28] sm:$0xff] %v257_v5 }
  0x20   : > { %v258_v6 = vld [vmem:[%s1900_s1 + $0x30] sm:$0xff]  ;;  %v259_v7 = vld [vmem:[%s1900_s1 + $0x38] sm:$0xff]  ;;  %v260_v8 = vld [vmem:[%s1900_s1 + $0x40] sm:$0xff] }
  0x21   : > { %274 = vst [vmem:[%s1904_s5 + $0x30] sm:$0xff] %v258_v6  ;;  %275 = vst [vmem:[%s1904_s5 + $0x38] sm:$0xff] %v259_v7 }
  0x22   : > { %276 = vst [vmem:[%s1904_s5 + $0x40] sm:$0xff] %v260_v8 }
  0x29   : > { %v261_v9 = vld [vmem:[%s1900_s1 + $0x48] sm:$0xff]  ;;  %v262_v10 = vld [vmem:[%s1900_s1 + $0x50] sm:$0xff]  ;;  %v263_v11 = vld [vmem:[%s1900_s1 + $0x58] sm:$0xff] }
  0x2a   : > { %277 = vst [vmem:[%s1904_s5 + $0x48] sm:$0xff] %v261_v9  ;;  %278 = vst [vmem:[%s1904_s5 + $0x50] sm:$0xff] %v262_v10 }
  0x2b   : > { %279 = vst [vmem:[%s1904_s5 + $0x58] sm:$0xff] %v263_v11 }
  0x32   : > { %v264_v12 = vld [vmem:[%s1900_s1 + $0x60] sm:$0xff]  ;;  %v265_v13 = vld [vmem:[%s1900_s1 + $0x68] sm:$0xff]  ;;  %v266_v14 = vld [vmem:[%s1900_s1 + $0x70] sm:$0xff] }
  0x33   : > { %280 = vst [vmem:[%s1904_s5 + $0x60] sm:$0xff] %v264_v12  ;;  %281 = vst [vmem:[%s1904_s5 + $0x68] sm:$0xff] %v265_v13 }
  0x34   : > { %282 = vst [vmem:[%s1904_s5 + $0x70] sm:$0xff] %v266_v14 }
  0x3b   : > { %v267_v15 = vld [vmem:[%s1900_s1 + $0x78] sm:$0xff] }
  0x3c   : > { %283 = vst [vmem:[%s1904_s5 + $0x78] sm:$0xff] %v267_v15 }
  0x3d PF: > { %v287_v20 = vld [vmem:[%s1904_s5 + $0x18] sm:$0xff]  ;;  %v288_v22 = vld [vmem:[%s1904_s5 + $0x20] sm:$0xff]  ;;  %v289_v23 = vld [vmem:[%s1904_s5 + $0x28] sm:$0xff]  ;;  %p1208_p5 = scmp.ge.s32.totalorder %s1452_s19, 2 }
  0x3e   : > { %v284_v16 = vld [vmem:[%s1904_s5] sm:$0xff]  ;;  %v285_v17 = vld [vmem:[%s1904_s5 + $0x8] sm:$0xff]  ;;  %v290_v24 = vld [vmem:[%s1904_s5 + $0x30] sm:$0xff]  ;;  %v318_v25 = vpack.c.bf16 %v289_v23, %v288_v22 }
  0x3f   : > { %v286_v18 = vld [vmem:[%s1904_s5 + $0x10] sm:$0xff]  ;;  %v316_v19 = vpack.c.bf16 %v285_v17, %v284_v16  ;;  %v291_v26 = vld [vmem:[%s1904_s5 + $0x38] sm:$0xff]  ;;  %v1382_v27 = vld [vmem:[%s1899_s0] sm:$0xff]  }
  0x40   : > { %v317_v21 = vpack.c.bf16 %v287_v20, %v286_v18  ;;  %1278 = vmatprep.mubr.bf16.mxu0 %v1382_v27  ;;  %v319_v28 = vpack.c.bf16 %v291_v26, %v290_v24  ;;  %v292_v29 = vld [vmem:[%s1904_s5 + $0x40] sm:$0xff]  ;;  %v293_v30 = vld [vmem:[%s1904_s5 + $0x48] sm:$0xff]  ;;  %v294_v31 = vld [vmem:[%s1904_s5 + $0x50] sm:$0xff] }
  0x41   : > { %1262 = vmatprep.subr.bf16.mxu0 %v316_v19  ;;  %v320_v32 = vpack.c.bf16 %v293_v30, %v292_v29  ;;  %v295_v33 = vld [vmem:[%s1904_s5 + $0x58] sm:$0xff]  ;;  %v1390_v34 = vld [vmem:[%s1466_s28] sm:$0xff]   ;;  %v1391_v35 = vld [vmem:[%s1466_s28 + $0x8] sm:$0xff]  }
  0x42   : > { %1263 = vmatpush3.bf16.msra.mxu0 %v316_v19  ;;  %v296_v36 = vld [vmem:[%s1904_s5 + $0x60] sm:$0xff]  ;;  %1294 = vmatprep.subr.bf16.mxu1 %v1390_v34  ;;  %v321_v37 = vpack.c.bf16 %v295_v33, %v294_v31  ;;  %v297_v38 = vld [vmem:[%s1904_s5 + $0x68] sm:$0xff]  ;;  %v1392_v39 = vld [vmem:[%s1466_s28 + $0x10] sm:$0xff]  }
  0x43   : > { %1264 = vmatprep.subr.bf16.mxu0 %v317_v21  ;;  %1295 = vmatpush3.bf16.msra.mxu1 %v1390_v34  ;;  %v298_v40 = vld [vmem:[%s1904_s5 + $0x70] sm:$0xff]  ;;  %v299_v41 = vld [vmem:[%s1904_s5 + $0x78] sm:$0xff]  ;;  %v322_v43 = vpack.c.bf16 %v297_v38, %v296_v36  ;;  %v1394_v45 = vld [vmem:[%s1466_s28 + $0x20] sm:$0xff]  }
  0x44   : > { %1296 = vmatprep.subr.bf16.mxu1 %v1391_v35  ;;  %v1393_v42 = vld [vmem:[%s1466_s28 + $0x18] sm:$0xff]   ;;  %v323_v44 = vpack.c.bf16 %v299_v41, %v298_v40  ;;  %v1395_v46 = vld [vmem:[%s1466_s28 + $0x28] sm:$0xff]   ;;  %v1384_v48 = vld [vmem:[%s1899_s0 + $0x10] sm:$0xff]  }
  0x45   : > { %v1383_v47 = vld [vmem:[%s1899_s0 + $0x8] sm:$0xff]   ;;  %v1385_v49 = vld [vmem:[%s1899_s0 + $0x18] sm:$0xff]   ;;  %v1386_v50 = vld [vmem:[%s1899_s0 + $0x20] sm:$0xff]  }
  0x46   : > { %1265 = vmatpush3.bf16.msra.mxu0 %v317_v21  ;;  %v1387_v51 = vld [vmem:[%s1899_s0 + $0x28] sm:$0xff]   ;;  %v1388_v52 = vld [vmem:[%s1899_s0 + $0x30] sm:$0xff]   ;;  %v1389_v53 = vld [vmem:[%s1899_s0 + $0x38] sm:$0xff]  }
  0x47   : > { %1266 = vmatprep.subr.bf16.mxu0 %v318_v25  ;;  %1297 = vmatpush3.bf16.msra.mxu1 %v1391_v35  ;;  %v1396_v54 = vld [vmem:[%s1466_s28 + $0x30] sm:$0xff]   ;;  %v1397_v55 = vld [vmem:[%s1466_s28 + $0x38] sm:$0xff]   ;;  %v1398_v56 = vld [vmem:[%s1466_s28 + $0x40] sm:$0xff]  }
  0x48   : > { %1298 = vmatprep.subr.bf16.mxu1 %v1392_v39  ;;  %v1399_v57 = vld [vmem:[%s1466_s28 + $0x48] sm:$0xff]   ;;  %v1400_v58 = vld [vmem:[%s1466_s28 + $0x50] sm:$0xff]   ;;  %v1401_v59 = vld [vmem:[%s1466_s28 + $0x58] sm:$0xff]  }
  0x49   : > { %v1655_v60 = vld [vmem:[%s1466_s28 + $0x60] sm:$0xff]   ;;  %v1659_v61 = vld [vmem:[%s1466_s28 + $0x68] sm:$0xff]   ;;  %v326_v62 = vld [vmem:[%s1461_s25 + $0x10] sm:$0xff] }
  0x4a   : > { %1267 = vmatpush3.bf16.msra.mxu0 %v318_v25  ;;  %v327_v0 = vld [vmem:[%s1461_s25 + $0x18] sm:$0xff]  ;;  %v324_v2 = vld [vmem:[%s1461_s25] sm:$0xff]  ;;  %v325_v3 = vld [vmem:[%s1461_s25 + $0x8] sm:$0xff] }
  0x4b   : > { %1268 = vmatprep.subr.bf16.mxu0 %v319_v28  ;;  %1299 = vmatpush3.bf16.msra.mxu1 %v1392_v39  ;;  %v330_v12 = vld [vmem:[%s1461_s25 + $0x30] sm:$0xff]  ;;  %v331_v14 = vld [vmem:[%s1461_s25 + $0x38] sm:$0xff]  ;;  %v328_v16 = vld [vmem:[%s1461_s25 + $0x20] sm:$0xff] }
  0x4c   : > { %1300 = vmatprep.subr.bf16.mxu1 %v1393_v42  ;;  %v329_v17 = vld [vmem:[%s1461_s25 + $0x28] sm:$0xff]  ;;  %v334_v26 = vld [vmem:[%s1461_s25 + $0x50] sm:$0xff]  ;;  %v332_v30 = vld [vmem:[%s1461_s25 + $0x40] sm:$0xff] }
  0x4d   : > { %v333_v31 = vld [vmem:[%s1461_s25 + $0x48] sm:$0xff]  ;;  %v338_v40 = vld [vmem:[%s1461_s25 + $0x70] sm:$0xff] }
  0x4e   : > { %1269 = vmatpush3.bf16.msra.mxu0 %v319_v28  ;;  %v335_v28 = vld [vmem:[%s1461_s25 + $0x58] sm:$0xff] }
  0x4f   : > { %1270 = vmatprep.subr.bf16.mxu0 %v320_v32  ;;  %1301 = vmatpush3.bf16.msra.mxu1 %v1393_v42  ;;  %v339_v42 = vld [vmem:[%s1461_s25 + $0x78] sm:$0xff] }
  0x50   : > { %1302 = vmatprep.subr.bf16.mxu1 %v1394_v45 }
  0x52   : > { %1271 = vmatpush3.bf16.msra.mxu0 %v320_v32 }
  0x53   : > { %1272 = vmatprep.subr.bf16.mxu0 %v321_v37  ;;  %1303 = vmatpush3.bf16.msra.mxu1 %v1394_v45  ;;  %v337_v45 = vld [vmem:[%s1461_s25 + $0x68] sm:$0xff] }
  0x54   : > { %1304 = vmatprep.subr.bf16.mxu1 %v1395_v46 }
  0x56   : > { %1273 = vmatpush3.bf16.msra.mxu0 %v321_v37 }
  0x57   : > { %1274 = vmatprep.subr.bf16.mxu0 %v322_v43  ;;  %1305 = vmatpush3.bf16.msra.mxu1 %v1395_v46 }
  0x58   : > { %1306 = vmatprep.subr.bf16.mxu1 %v1396_v54 }
  0x5a   : > { %1275 = vmatpush3.bf16.msra.mxu0 %v322_v43 }
  0x5b   : > { %1276 = vmatprep.subr.bf16.mxu0 %v323_v44  ;;  %1307 = vmatpush3.bf16.msra.mxu1 %v1396_v54  ;;  %v1404_v54 = vld [vmem:[%s1466_s28 + $0x70] sm:$0xff]  }
  0x5c   : > { %1308 = vmatprep.subr.bf16.mxu1 %v1397_v55 }
  0x5e   : > { %1277 = vmatpush3.bf16.msra.mxu0 %v323_v44  ;;  %v336_v44 = vld [vmem:[%s1461_s25 + $0x60] sm:$0xff] }
  0x5f   : > { %1309 = vmatpush3.bf16.msra.mxu1 %v1397_v55  ;;  %1326 = vmatprep.subr.bf16.mxu0 %v1398_v56  ;;  %v1405_v55 = vld [vmem:[%s1466_s28 + $0x78] sm:$0xff]  }
  0x60   : > { %1358 = vmatprep.subr.bf16.mxu1 %v1398_v56 }
  0x61   : > { %1279 = vmatmul.mubr.bf16.vlgmr.msra.gmra.mrb[0].mxu0 %v1383_v47 }
  0x62   : > { %1282 = vmatprep.mubr.bf16.mxu0 %v1384_v48  ;;  %1327 = vmatpush3.bf16.msra.mxu0 %v1398_v56 }
  0x63   : > { %1328 = vmatprep.subr.bf16.mxu0 %v1399_v57 }
  0x66   : > { %1329 = vmatpush3.bf16.msra.mxu0 %v1399_v57 }
  0x67   : > { %1330 = vmatprep.subr.bf16.mxu0 %v1400_v58 }
  0x69   : > { %1283 = vmatmul.mubr.bf16.gmra.mrb[4].mxu0 %v1385_v49 }
  0x6a   : > { %1286 = vmatprep.mubr.bf16.mxu0 %v1386_v50  ;;  %1331 = vmatpush3.bf16.msra.mxu0 %v1400_v58 }
  0x6b   : > { %1332 = vmatprep.subr.bf16.mxu0 %v1401_v59 }
  0x6e   : > { %1333 = vmatpush3.bf16.msra.mxu0 %v1401_v59 }
  0x6f   : > { %1334 = vmatprep.subr.bf16.mxu0 %v1655_v60 }
  0x71   : > { %1287 = vmatmul.mubr.bf16.gmra.mrb[8].mxu0 %v1387_v51 }
  0x72   : > { %1290 = vmatprep.mubr.bf16.mxu0 %v1388_v52  ;;  %1335 = vmatpush3.bf16.msra.mxu0 %v1655_v60 }
  0x73   : > { %1336 = vmatprep.subr.bf16.mxu0 %v1659_v61 }
  0x76   : > { %1337 = vmatpush3.bf16.msra.mxu0 %v1659_v61 }
  0x77   : > { %1338 = vmatprep.subr.bf16.mxu0 %v1404_v54 }
  0x79   : > { %1291 = vmatmul.mubr.bf16.gmra.mrb[12].mxu0 %v1389_v53 }
  0x7a   : > { %1339 = vmatpush3.bf16.msra.mxu0 %v1404_v54 }
  0x7b   : > { %1340 = vmatprep.subr.bf16.mxu0 %v1405_v55 }
  0x7e   : > { %1341 = vmatpush3.bf16.msra.mxu0 %v1405_v55 }
 0x134   : > { %v1280_v63 = vpop.f32.mrb[0].mxu0 }
 0x135   : > { %v422_v1 = vpop.f32.mrb[1].mxu0  ;;  %v431_v5 = vadd.f32 %v1280_v63, %v326_v62 }
 0x136   : > { %v1281_v4 = vpop.f32.mrb[2].mxu0  ;;  %v423_v8 = vadd.f32 %v422_v1, %v324_v2 }
 0x137   : > { %v434_v6 = vadd.f32 %v1281_v4, %v327_v0  ;;  %v425_v7 = vpop.f32.mrb[3].mxu0 }
 0x138   : > { %v426_v9 = vadd.f32 %v425_v7, %v325_v3 }
 0x139   : > { %v519_v10 = vpack.c.bf16 %v434_v6, %v431_v5 }
 0x13a   : > { %v518_v11 = vpack.c.bf16 %v426_v9, %v423_v8 }
 0x13c   : > { %v1284_v13 = vpop.f32.mrb[4].mxu0  ;;  %1310 = vmatprep.mubr.bf16.mxu1 %v518_v11 }
 0x13d   : > { %v438_v15 = vpop.f32.mrb[5].mxu0  ;;  %1311 = vmatmul.mubr.bf16.vlgmr.msra.gmra.mrb[0].mxu1 %v519_v10  ;;  %v447_v19 = vadd.f32 %v1284_v13, %v330_v12 }
 0x13e   : > { %v1285_v18 = vpop.f32.mrb[6].mxu0  ;;  %1366 = vmatpush3.bf16.msra.mxu1 %v1398_v56  ;;  %v439_v22 = vadd.f32 %v438_v15, %v328_v16  ;;  %v526_v56 = vlaneseq }
 0x13f   : > { %v450_v20 = vadd.f32 %v1285_v18, %v331_v14  ;;  %v441_v21 = vpop.f32.mrb[7].mxu0  ;;  %1359 = vmatprep.subr.bf16.mxu1 %v1399_v57 }
 0x140   : > { %v442_v23 = vadd.f32 %v441_v21, %v329_v17 }
 0x141   : > { %v521_v24 = vpack.c.bf16 %v450_v20, %v447_v19 }
 0x142   : > { %v520_v25 = vpack.c.bf16 %v442_v23, %v439_v22  ;;  %1367 = vmatpush3.bf16.msra.mxu1 %v1399_v57  ;;  %v1686_v57 = vshrl.u32 %v526_v56, 7 }
 0x143   : > { %1360 = vmatprep.subr.bf16.mxu1 %v1400_v58 }
 0x144   : > { %v1288_v27 = vpop.f32.mrb[8].mxu0  ;;  %1314 = vmatprep.mubr.bf16.mxu1 %v520_v25 }
 0x145   : > { %v454_v29 = vpop.f32.mrb[9].mxu0  ;;  %1315 = vmatmul.mubr.bf16.gmra.mrb[4].mxu1 %v521_v24  ;;  %v463_v33 = vadd.f32 %v1288_v27, %v334_v26 }
 0x146   : > { %v1289_v32 = vpop.f32.mrb[10].mxu0  ;;  %1368 = vmatpush3.bf16.msra.mxu1 %v1400_v58  ;;  %v455_v36 = vadd.f32 %v454_v29, %v332_v30  ;;  %v528_v58 = vsub.s32 0, %v1686_v57 }
 0x147   : > { %v466_v34 = vadd.f32 %v1289_v32, %v335_v28  ;;  %v457_v35 = vpop.f32.mrb[11].mxu0  ;;  %1361 = vmatprep.subr.bf16.mxu1 %v1401_v59 }
 0x148   : > { %v458_v37 = vadd.f32 %v457_v35, %v333_v31 }
 0x149   : > { %v523_v38 = vpack.c.bf16 %v466_v34, %v463_v33 }
 0x14a   : > { %v522_v39 = vpack.c.bf16 %v458_v37, %v455_v36  ;;  %1369 = vmatpush3.bf16.msra.mxu1 %v1401_v59  ;;  %v1690_v59 = vld [vmem:[%s1471_s6] sm:$0xff] }
 0x14b   : > { %1362 = vmatprep.subr.bf16.mxu1 %v1655_v60 }
 0x14c   : > { %v1292_v41 = vpop.f32.mrb[12].mxu0  ;;  %1318 = vmatprep.mubr.bf16.mxu1 %v522_v39 }
 0x14d   : > { %v470_v43 = vpop.f32.mrb[13].mxu0  ;;  %1319 = vmatmul.mubr.bf16.gmra.mrb[8].mxu1 %v523_v38  ;;  %v479_v47 = vadd.f32 %v1292_v41, %v338_v40 }
 0x14e   : > { %v1293_v46 = vpop.f32.mrb[14].mxu0  ;;  %1370 = vmatpush3.bf16.msra.mxu1 %v1655_v60  ;;  %v471_v50 = vadd.f32 %v470_v43, %v336_v44  ;;  %v529_v60 = vrot.slane %v1690_v59, %v528_v58 }
 0x14f   : > { %v482_v48 = vadd.f32 %v1293_v46, %v339_v42  ;;  %v473_v49 = vpop.f32.mrb[15].mxu0  ;;  %1363 = vmatprep.subr.bf16.mxu1 %v1659_v61 }
 0x150   : > { %v474_v51 = vadd.f32 %v473_v49, %v337_v45 }
 0x151   : > { %v525_v52 = vpack.c.bf16 %v482_v48, %v479_v47 }
 0x152   : > { %v524_v53 = vpack.c.bf16 %v474_v51, %v471_v50  ;;  %1371 = vmatpush3.bf16.msra.mxu1 %v1659_v61 }
 0x153   : > { %1364 = vmatprep.subr.bf16.mxu1 %v1404_v54 }
 0x154   : > { %1322 = vmatprep.mubr.bf16.mxu1 %v524_v53  ;;  %v701_v53 = vsub.s32 1, %v1686_v57 }
 0x155   : > { %1323 = vmatmul.mubr.bf16.gmra.mrb[12].mxu1 %v525_v52 }
 0x156   : > { %1372 = vmatpush3.bf16.msra.mxu1 %v1404_v54  ;;  %v1695_v54 = vrot.slane %v1690_v59, %v701_v53 }
 0x157   : > { %1365 = vmatprep.subr.bf16.mxu1 %v1405_v55 }
 0x15a   : > { %1373 = vmatpush3.bf16.msra.mxu1 %v1405_v55 }
 0x210   : > { %v1312_v61 = vpop.f32.mrb[0].mxu1 }
 0x211   : > { %v621_v62 = vadd.f32 %v1312_v61, %v529_v60  ;;  %v612_v63 = vpop.f32.mrb[1].mxu1 }
 0x212   : > { %v613_v0 = vadd.f32 %v612_v63, %v529_v60  ;;  %v1313_v1 = vpop.f32.mrb[2].mxu1 }
 0x213   : > { %v624_v2 = vadd.f32 %v1313_v1, %v529_v60  ;;  %v615_v3 = vpop.f32.mrb[3].mxu1  ;;  %v677_v5 = vmax.f32 %v621_v62, 0.0 }
 0x214   : > { %v616_v4 = vadd.f32 %v615_v3, %v529_v60  ;;  %v675_v7 = vmax.f32 %v613_v0, 0.0 }
 0x215   : > { %v678_v6 = vmax.f32 %v624_v2, 0.0 }
 0x216   : > { %v676_v8 = vmax.f32 %v616_v4, 0.0 }
 0x217   : > { %v692_v9 = vpack.c.bf16 %v678_v6, %v677_v5 }
 0x218   : > { %v691_v10 = vpack.c.bf16 %v676_v8, %v675_v7  ;;  %v1316_v11 = vpop.f32.mrb[4].mxu1 }
 0x219   : > { %v637_v12 = vadd.f32 %v1316_v11, %v529_v60  ;;  %v628_v13 = vpop.f32.mrb[5].mxu1 }
 0x21a   : > { %v629_v14 = vadd.f32 %v628_v13, %v529_v60  ;;  %v1317_v15 = vpop.f32.mrb[6].mxu1  ;;  %1342 = vmatprep.mubr.bf16.mxu0 %v691_v10 }
 0x21b   : > { %v640_v16 = vadd.f32 %v1317_v15, %v529_v60  ;;  %v631_v17 = vpop.f32.mrb[7].mxu1  ;;  %1343 = vmatmul.mubr.bf16.vlgmr.msra.gmra.mrb[16].mxu0 %v692_v9  ;;  %v681_v19 = vmax.f32 %v637_v12, 0.0 }
 0x21c   : > { %v632_v18 = vadd.f32 %v631_v17, %v529_v60  ;;  %v679_v21 = vmax.f32 %v629_v14, 0.0 }
 0x21d   : > { %v682_v20 = vmax.f32 %v640_v16, 0.0 }
 0x21e   : > { %v680_v22 = vmax.f32 %v632_v18, 0.0 }
 0x21f   : > { %v694_v23 = vpack.c.bf16 %v682_v20, %v681_v19 }
 0x220   : > { %v693_v24 = vpack.c.bf16 %v680_v22, %v679_v21  ;;  %v1320_v25 = vpop.f32.mrb[8].mxu1 }
 0x221   : > { %v653_v26 = vadd.f32 %v1320_v25, %v529_v60  ;;  %v644_v27 = vpop.f32.mrb[9].mxu1 }
 0x222   : > { %v645_v28 = vadd.f32 %v644_v27, %v529_v60  ;;  %v1321_v29 = vpop.f32.mrb[10].mxu1  ;;  %1346 = vmatprep.mubr.bf16.mxu0 %v693_v24 }
 0x223   : > { %v656_v30 = vadd.f32 %v1321_v29, %v529_v60  ;;  %v647_v31 = vpop.f32.mrb[11].mxu1  ;;  %1347 = vmatmul.mubr.bf16.gmra.mrb[20].mxu0 %v694_v23  ;;  %v685_v33 = vmax.f32 %v653_v26, 0.0 }
 0x224   : > { %v648_v32 = vadd.f32 %v647_v31, %v529_v60  ;;  %v683_v35 = vmax.f32 %v645_v28, 0.0 }
 0x225   : > { %v686_v34 = vmax.f32 %v656_v30, 0.0 }
 0x226   : > { %v684_v36 = vmax.f32 %v648_v32, 0.0 }
 0x227   : > { %v696_v37 = vpack.c.bf16 %v686_v34, %v685_v33 }
 0x228   : > { %v695_v38 = vpack.c.bf16 %v684_v36, %v683_v35  ;;  %v1324_v39 = vpop.f32.mrb[12].mxu1 }
 0x229   : > { %v669_v40 = vadd.f32 %v1324_v39, %v529_v60  ;;  %v660_v41 = vpop.f32.mrb[13].mxu1 }
 0x22a   : > { %v661_v42 = vadd.f32 %v660_v41, %v529_v60  ;;  %v1325_v43 = vpop.f32.mrb[14].mxu1  ;;  %1350 = vmatprep.mubr.bf16.mxu1 %v695_v38 }
 0x22b   : > { %v672_v44 = vadd.f32 %v1325_v43, %v529_v60  ;;  %v663_v45 = vpop.f32.mrb[15].mxu1  ;;  %1351 = vmatmul.mubr.bf16.vlgmr.msra.gmra.mrb[16].mxu1 %v696_v37  ;;  %v689_v47 = vmax.f32 %v669_v40, 0.0 }
 0x22c   : > { %v664_v46 = vadd.f32 %v663_v45, %v529_v60  ;;  %v687_v49 = vmax.f32 %v661_v42, 0.0 }
 0x22d   : > { %v690_v48 = vmax.f32 %v672_v44, 0.0 }
 0x22e   : > { %v688_v50 = vmax.f32 %v664_v46, 0.0 }
 0x22f   : > { %v698_v51 = vpack.c.bf16 %v690_v48, %v689_v47 }
 0x230   : > { %v697_v52 = vpack.c.bf16 %v688_v50, %v687_v49 }
 0x232   : > { %1354 = vmatprep.mubr.bf16.mxu1 %v697_v52 }
 0x233   : > { %1355 = vmatmul.mubr.bf16.gmra.mrb[20].mxu1 %v698_v51 }
 0x2ee   : > { %v1344_v55 = vpop.f32.mrb[16].mxu0 }
 0x2ef   : > { %v785_v56 = vpop.f32.mrb[17].mxu0  ;;  %v1698_v58 = vadd.f32 %v1344_v55, %v1695_v54 }
 0x2f0   : > { %v1345_v61 = vpop.f32.mrb[18].mxu0  ;;  %v1704_v63 = vadd.f32 %v785_v56, %v1695_v54 }
 0x2f1   : > { %v1701_v60 = vadd.f32 %v1345_v61, %v1695_v54  ;;  %v788_v62 = vpop.f32.mrb[19].mxu0  ;;  %v915_v1 = vmul.f32 0.0, %v1698_v58 }
 0x2f2   : > { %v1707_v0 = vadd.f32 %v788_v62, %v1695_v54  ;;  %v951_v4 = vmul.f32 %v1704_v63, %v1704_v63 }
 0x2f3   : > { %v916_v3 = vmul.f32 0.0, %v1701_v60  ;;  %v953_v10 = vmul.f32 %v915_v1, %v1698_v58 }
 0x2f4   : > { %v914_v2 = vmul.f32 0.0, %v1707_v0 }
 0x2f5   : > { %v954_v15 = vmul.f32 %v916_v3, %v1701_v60 }
 0x2f6   : > { %v929_v5 = vadd.f32 %v914_v2, %v1704_v63  ;;  %v952_v6 = vmul.f32 %v914_v2, %v1707_v0  ;;  %v1348_v7 = vpop.f32.mrb[20].mxu0 }
 0x2f7   : > { %v1717_v8 = vadd.f32 %v1348_v7, %v1695_v54  ;;  %v801_v9 = vpop.f32.mrb[21].mxu0 }
 0x2f8   : > { %v930_v11 = vadd.f32 %v929_v5, %v915_v1  ;;  %v967_v12 = vadd.f32 %v952_v6, %v951_v4  ;;  %v1721_v13 = vadd.f32 %v801_v9, %v1695_v54  ;;  %v1349_v14 = vpop.f32.mrb[22].mxu0 }
 0x2f9   : > { %v1725_v16 = vadd.f32 %v1349_v14, %v1695_v54  ;;  %v804_v17 = vpop.f32.mrb[23].mxu0  ;;  %v919_v22 = vmul.f32 0.0, %v1717_v8 }
 0x2fa   : > { %v968_v18 = vadd.f32 %v967_v12, %v953_v10  ;;  %v917_v19 = vmul.f32 0.0, %v1721_v13  ;;  %v931_v20 = vadd.f32 %v930_v11, %v916_v3  ;;  %v1729_v21 = vadd.f32 %v804_v17, %v1695_v54 }
 0x2fb   : > { %v920_v27 = vmul.f32 0.0, %v1725_v16  ;;  %v957_v34 = vmul.f32 %v919_v22, %v1717_v8 }
 0x2fc   : > { %v932_v23 = vadd.f32 %v931_v20, %v917_v19  ;;  %v955_v24 = vmul.f32 %v917_v19, %v1721_v13  ;;  %v969_v25 = vadd.f32 %v968_v18, %v954_v15  ;;  %v918_v26 = vmul.f32 0.0, %v1729_v21 }
 0x2fd   : > { %v958_v39 = vmul.f32 %v920_v27, %v1725_v16 }
 0x2fe   : > { %v970_v28 = vadd.f32 %v969_v25, %v955_v24  ;;  %v933_v29 = vadd.f32 %v932_v23, %v918_v26  ;;  %v956_v30 = vmul.f32 %v918_v26, %v1729_v21  ;;  %v1352_v31 = vpop.f32.mrb[16].mxu1 }
 0x2ff   : > { %v1737_v32 = vadd.f32 %v1352_v31, %v1695_v54  ;;  %v817_v33 = vpop.f32.mrb[17].mxu1 }
 0x300   : > { %v934_v35 = vadd.f32 %v933_v29, %v919_v22  ;;  %v971_v36 = vadd.f32 %v970_v28, %v956_v30  ;;  %v1741_v37 = vadd.f32 %v817_v33, %v1695_v54  ;;  %v1353_v38 = vpop.f32.mrb[18].mxu1 }
 0x301   : > { %v1745_v40 = vadd.f32 %v1353_v38, %v1695_v54  ;;  %v820_v41 = vpop.f32.mrb[19].mxu1  ;;  %v923_v46 = vmul.f32 0.0, %v1737_v32 }
 0x302   : > { %v972_v42 = vadd.f32 %v971_v36, %v957_v34  ;;  %v921_v43 = vmul.f32 0.0, %v1741_v37  ;;  %v935_v44 = vadd.f32 %v934_v35, %v920_v27  ;;  %v1749_v45 = vadd.f32 %v820_v41, %v1695_v54 }
 0x303   : > { %v924_v51 = vmul.f32 0.0, %v1745_v40  ;;  %v961_v1 = vmul.f32 %v923_v46, %v1737_v32 }
 0x304   : > { %v936_v47 = vadd.f32 %v935_v44, %v921_v43  ;;  %v959_v48 = vmul.f32 %v921_v43, %v1741_v37  ;;  %v973_v49 = vadd.f32 %v972_v42, %v958_v39  ;;  %v922_v50 = vmul.f32 0.0, %v1749_v45 }
 0x305   : > { %v962_v6 = vmul.f32 %v924_v51, %v1745_v40 }
 0x306   : > { %v974_v52 = vadd.f32 %v973_v49, %v959_v48  ;;  %v937_v53 = vadd.f32 %v936_v47, %v922_v50  ;;  %v960_v55 = vmul.f32 %v922_v50, %v1749_v45  ;;  %v1356_v56 = vpop.f32.mrb[20].mxu1 }
 0x307   : > { %v1757_v61 = vadd.f32 %v1356_v56, %v1695_v54  ;;  %v833_v62 = vpop.f32.mrb[21].mxu1 }
 0x308   : > { %v938_v2 = vadd.f32 %v937_v53, %v923_v46  ;;  %v975_v3 = vadd.f32 %v974_v52, %v960_v55  ;;  %v1761_v4 = vadd.f32 %v833_v62, %v1695_v54  ;;  %v1357_v5 = vpop.f32.mrb[22].mxu1 }
 0x309   : > { %v1765_v7 = vadd.f32 %v1357_v5, %v1695_v54  ;;  %v836_v9 = vpop.f32.mrb[23].mxu1  ;;  %v927_v15 = vmul.f32 0.0, %v1757_v61 }
 0x30a   : > { %v976_v10 = vadd.f32 %v975_v3, %v961_v1  ;;  %v925_v11 = vmul.f32 0.0, %v1761_v4  ;;  %v939_v12 = vadd.f32 %v938_v2, %v924_v51  ;;  %v1769_v14 = vadd.f32 %v836_v9, %v1695_v54 }
 0x30b   : > { %v928_v23 = vmul.f32 0.0, %v1765_v7  ;;  %v965_v26 = vmul.f32 %v927_v15, %v1757_v61 }
 0x30c   : > { %v940_v17 = vadd.f32 %v939_v12, %v925_v11  ;;  %v963_v18 = vmul.f32 %v925_v11, %v1761_v4  ;;  %v977_v19 = vadd.f32 %v976_v10, %v962_v6  ;;  %v926_v20 = vmul.f32 0.0, %v1769_v14 }
 0x30d   : > { %v966_v54 = vmul.f32 %v928_v23, %v1765_v7 }
 0x30e   : > { %v978_v22 = vadd.f32 %v977_v19, %v963_v18  ;;  %v941_v24 = vadd.f32 %v940_v17, %v926_v20  ;;  %v964_v25 = vmul.f32 %v926_v20, %v1769_v14 }
 0x310   : > { %v942_v27 = vadd.f32 %v941_v24, %v927_v15  ;;  %v979_v28 = vadd.f32 %v978_v22, %v964_v25 }
 0x312   : > { %v943_v29 = vadd.f32 %v942_v27, %v928_v23  ;;  %v980_v30 = vadd.f32 %v979_v28, %v965_v26 }
 0x314   : > { %v944_v31 = vrot.slane %v943_v29, 4  ;;  %v981_v33 = vadd.f32 %v980_v30, %v966_v54 }
 0x316   : > { %v945_v34 = vadd.f32 %v944_v31, %v943_v29  ;;  %v982_v35 = vrot.slane %v981_v33, 4 }
 0x318   : > { %v946_v36 = vrot.slane %v945_v34, 2  ;;  %v983_v38 = vadd.f32 %v982_v35, %v981_v33 }
 0x31a   : > { %v947_v39 = vadd.f32 %v946_v36, %v945_v34  ;;  %v984_v41 = vrot.slane %v983_v38, 2 }
 0x31c   : > { %v948_v42 = vrot.slane %v947_v39, 1  ;;  %v985_v43 = vadd.f32 %v984_v41, %v983_v38 }
 0x31e   : > { %v949_v44 = vadd.f32 %v948_v42, %v947_v39  ;;  %v986_v46 = vrot.slane %v985_v43, 1 }
 0x320   : > { %v950_v47 = vmul.f32 0.125, %v949_v44  ;;  %v987_v48 = vadd.f32 %v986_v46, %v985_v43 }
 0x322   : > { %v988_v49 = vmul.f32 0.125, %v987_v48  ;;  %v989_v50 = vmul.f32 %v950_v47, %v950_v47  ;;  %v992_v51 = vsub.f32 %v1704_v63, %v950_v47  ;;  %v993_v52 = vsub.f32 %v1707_v0, %v950_v47 }
 0x323   : > { %v994_v53 = vsub.f32 %v1698_v58, %v950_v47  ;;  %v995_v55 = vsub.f32 %v1701_v60, %v950_v47  ;;  %v996_v56 = vsub.f32 %v1721_v13, %v950_v47  ;;  %v997_v62 = vsub.f32 %v1729_v21, %v950_v47 }
 0x324   : > { %v990_v1 = vsub.f32 %v988_v49, %v989_v50  ;;  %v998_v2 = vsub.f32 %v1717_v8, %v950_v47  ;;  %v999_v3 = vsub.f32 %v1725_v16, %v950_v47  ;;  %v1000_v5 = vsub.f32 %v1741_v37, %v950_v47 }
 0x325   : > { %v1001_v6 = vsub.f32 %v1749_v45, %v950_v47  ;;  %v1002_v63 = vsub.f32 %v1737_v32, %v950_v47  ;;  %v1003_v0 = vsub.f32 %v1745_v40, %v950_v47  ;;  %v1004_v58 = vsub.f32 %v1761_v4, %v950_v47 }
 0x326   : > { %v991_v60 = vmax.f32 %v990_v1, 0.0  ;;  %v1005_v13 = vsub.f32 %v1769_v14, %v950_v47  ;;  %v1006_v21 = vsub.f32 %v1757_v61, %v950_v47  ;;  %v1007_v9 = vsub.f32 %v1765_v7, %v950_v47 }
 0x327   : > { %v1028_v16 = vsub.s32 2, %v1686_v57  ;;  %v1048_v37 = vsub.s32 3, %v1686_v57 }
 0x328   : > { %v1008_v8 = vadd.f32 1e-05, %v991_v60 }
 0x329   : > { %v1029_v32 = vrot.slane %v1690_v59, %v1028_v16  ;;  %v1049_v40 = vrot.slane %v1690_v59, %v1048_v37 }
 0x32a   : > { %1406 = vrsqrt.f32 %v1008_v8 }
 0x334   : > { %v1407_v45 = vpop.eup %1406 }
 0x335   : > { %v1010_v10 = vmul.f32 %v1407_v45, %v992_v51  ;;  %v1011_v4 = vmul.f32 %v1407_v45, %v993_v52  ;;  %v1012_v11 = vmul.f32 %v1407_v45, %v994_v53  ;;  %v1013_v12 = vmul.f32 %v1407_v45, %v995_v55 }
 0x336   : > { %v1014_v14 = vmul.f32 %v1407_v45, %v996_v56  ;;  %v1015_v15 = vmul.f32 %v1407_v45, %v997_v62  ;;  %v1016_v61 = vmul.f32 %v1407_v45, %v998_v2  ;;  %v1017_v17 = vmul.f32 %v1407_v45, %v999_v3 }
 0x337   : > { %v1018_v7 = vmul.f32 %v1407_v45, %v1000_v5  ;;  %v1019_v18 = vmul.f32 %v1407_v45, %v1001_v6  ;;  %v1020_v19 = vmul.f32 %v1407_v45, %v1002_v63  ;;  %v1021_v20 = vmul.f32 %v1407_v45, %v1003_v0 }
 0x338   : > { %v1022_v22 = vmul.f32 %v1407_v45, %v1004_v58  ;;  %v1023_v23 = vmul.f32 %v1407_v45, %v1005_v13  ;;  %v1024_v57 = vmul.f32 %v1407_v45, %v1006_v21  ;;  %v1025_v24 = vmul.f32 %v1407_v45, %v1007_v9 }
 0x339   : > { %v1030_v25 = vmul.f32 %v1029_v32, %v1010_v10  ;;  %v1031_v26 = vmul.f32 %v1029_v32, %v1011_v4  ;;  %v1032_v27 = vmul.f32 %v1029_v32, %v1012_v11  ;;  %v1033_v59 = vmul.f32 %v1029_v32, %v1013_v12 }
 0x33a   : > { %v1034_v28 = vmul.f32 %v1029_v32, %v1014_v14  ;;  %v1035_v54 = vmul.f32 %v1029_v32, %v1015_v15  ;;  %v1036_v29 = vmul.f32 %v1029_v32, %v1016_v61  ;;  %v1037_v30 = vmul.f32 %v1029_v32, %v1017_v17  ;;  %1069 = sbr.rel (%p1208_p5) target bundleno = 843 (0x34b), region = 48 }
 0x33b   : > { %v1038_v31 = vmul.f32 %v1029_v32, %v1018_v7  ;;  %v1039_v33 = vmul.f32 %v1029_v32, %v1019_v18  ;;  %v1040_v34 = vmul.f32 %v1029_v32, %v1020_v19  ;;  %v1041_v35 = vmul.f32 %v1029_v32, %v1021_v20 }
 0x33c   : > { %v1042_v36 = vmul.f32 %v1029_v32, %v1022_v22  ;;  %v1043_v38 = vmul.f32 %v1029_v32, %v1023_v23  ;;  %v1044_v39 = vmul.f32 %v1029_v32, %v1024_v57  ;;  %v1045_v41 = vmul.f32 %v1029_v32, %v1025_v24 }
 0x33d   : > { %v1050_v42 = vadd.f32 %v1049_v40, %v1030_v25  ;;  %v1051_v43 = vadd.f32 %v1049_v40, %v1031_v26  ;;  %v1052_v44 = vadd.f32 %v1049_v40, %v1032_v27  ;;  %v1053_v46 = vadd.f32 %v1049_v40, %v1033_v59 }
 0x33e   : > { %v1054_v47 = vadd.f32 %v1049_v40, %v1034_v28  ;;  %v1055_v48 = vadd.f32 %v1049_v40, %v1035_v54  ;;  %v1056_v49 = vadd.f32 %v1049_v40, %v1036_v29  ;;  %v1057_v50 = vadd.f32 %v1049_v40, %v1037_v30 }
 0x33f   : > { %v1058_v51 = vadd.f32 %v1049_v40, %v1038_v31  ;;  %v1059_v52 = vadd.f32 %v1049_v40, %v1039_v33  ;;  %v1060_v53 = vadd.f32 %v1049_v40, %v1040_v34  ;;  %v1061_v55 = vadd.f32 %v1049_v40, %v1041_v35 }
 0x340   : > { %v1062_v56 = vadd.f32 %v1049_v40, %v1042_v36  ;;  %v1063_v62 = vadd.f32 %v1049_v40, %v1043_v38  ;;  %v1064_v1 = vadd.f32 %v1049_v40, %v1044_v39  ;;  %v1065_v2 = vadd.f32 %v1049_v40, %v1045_v41 }
 0x341   : > { %v1070_v3 = vmax.f32 %v1050_v42, 0.0  ;;  %v1071_v5 = vmax.f32 %v1051_v43, 0.0  ;;  %v1072_v6 = vmax.f32 %v1052_v44, 0.0  ;;  %v1073_v63 = vmax.f32 %v1053_v46, 0.0 }
 0x342   : > { %v1074_v0 = vmax.f32 %v1054_v47, 0.0  ;;  %v1075_v58 = vmax.f32 %v1055_v48, 0.0  ;;  %v1076_v60 = vmax.f32 %v1056_v49, 0.0  ;;  %v1077_v13 = vmax.f32 %v1057_v50, 0.0 }
 0x343   : > { %1086 = vst [vmem:[%s1904_s5] sm:$0xff] %v1070_v3  ;;  %1087 = vst [vmem:[%s1904_s5 + $0x8] sm:$0xff] %v1071_v5  ;;  %v1078_v21 = vmax.f32 %v1058_v51, 0.0  ;;  %v1079_v9 = vmax.f32 %v1059_v52, 0.0  ;;  %v1080_v8 = vmax.f32 %v1060_v53, 0.0  ;;  %v1081_v16 = vmax.f32 %v1061_v55, 0.0 }
 0x344   : > { %1088 = vst [vmem:[%s1904_s5 + $0x10] sm:$0xff] %v1072_v6  ;;  %1089 = vst [vmem:[%s1904_s5 + $0x18] sm:$0xff] %v1073_v63  ;;  %v1082_v37 = vmax.f32 %v1062_v56, 0.0  ;;  %v1083_v45 = vmax.f32 %v1063_v62, 0.0  ;;  %v1084_v32 = vmax.f32 %v1064_v1, 0.0  ;;  %v1085_v40 = vmax.f32 %v1065_v2, 0.0 }
 0x345   : > { %1090 = vst [vmem:[%s1904_s5 + $0x20] sm:$0xff] %v1074_v0  ;;  %1091 = vst [vmem:[%s1904_s5 + $0x28] sm:$0xff] %v1075_v58 }
 0x346   : > { %1092 = vst [vmem:[%s1904_s5 + $0x30] sm:$0xff] %v1076_v60  ;;  %1093 = vst [vmem:[%s1904_s5 + $0x38] sm:$0xff] %v1077_v13 }
 0x347   : > { %1094 = vst [vmem:[%s1904_s5 + $0x40] sm:$0xff] %v1078_v21  ;;  %1095 = vst [vmem:[%s1904_s5 + $0x48] sm:$0xff] %v1079_v9 }
 0x348   : > { %1096 = vst [vmem:[%s1904_s5 + $0x50] sm:$0xff] %v1080_v8  ;;  %1097 = vst [vmem:[%s1904_s5 + $0x58] sm:$0xff] %v1081_v16 }
 0x349   : > { %1098 = vst [vmem:[%s1904_s5 + $0x60] sm:$0xff] %v1082_v37  ;;  %1099 = vst [vmem:[%s1904_s5 + $0x68] sm:$0xff] %v1083_v45 }
 0x34a   : > { %1100 = vst [vmem:[%s1904_s5 + $0x70] sm:$0xff] %v1084_v32  ;;  %1101 = vst [vmem:[%s1904_s5 + $0x78] sm:$0xff] %v1085_v40 }
 0x34b PF: > { %p1209_p6 = scmp.ne.s32.totalorder %s1452_s19, 2 }
 0x34c   : > { %1106 = vst [vmem:[%s1904_s5] sm:$0xff] (!%p1209_p6), %v1050_v42  ;;  %1107 = vst [vmem:[%s1904_s5 + $0x8] sm:$0xff] (!%p1209_p6), %v1051_v43 }
 0x34d   : > { %1105 = sbr.rel (%p1209_p6) target bundleno = 852 (0x354), region = 52  ;;  %1108 = vst [vmem:[%s1904_s5 + $0x10] sm:$0xff] (!%p1209_p6), %v1052_v44  ;;  %1109 = vst [vmem:[%s1904_s5 + $0x18] sm:$0xff] (!%p1209_p6), %v1053_v46 }
 0x34e   : > { %1110 = vst [vmem:[%s1904_s5 + $0x20] sm:$0xff] (!%p1209_p6), %v1054_v47  ;;  %1111 = vst [vmem:[%s1904_s5 + $0x28] sm:$0xff] (!%p1209_p6), %v1055_v48 }
 0x34f   : > { %1112 = vst [vmem:[%s1904_s5 + $0x30] sm:$0xff] (!%p1209_p6), %v1056_v49  ;;  %1113 = vst [vmem:[%s1904_s5 + $0x38] sm:$0xff] (!%p1209_p6), %v1057_v50 }
 0x350   : > { %1114 = vst [vmem:[%s1904_s5 + $0x40] sm:$0xff] (!%p1209_p6), %v1058_v51  ;;  %1115 = vst [vmem:[%s1904_s5 + $0x48] sm:$0xff] (!%p1209_p6), %v1059_v52 }
 0x351   : > { %1116 = vst [vmem:[%s1904_s5 + $0x50] sm:$0xff] (!%p1209_p6), %v1060_v53  ;;  %1117 = vst [vmem:[%s1904_s5 + $0x58] sm:$0xff] (!%p1209_p6), %v1061_v55 }
 0x352   : > { %1118 = vst [vmem:[%s1904_s5 + $0x60] sm:$0xff] (!%p1209_p6), %v1062_v56  ;;  %1119 = vst [vmem:[%s1904_s5 + $0x68] sm:$0xff] (!%p1209_p6), %v1063_v62 }
 0x353   : > { %1120 = vst [vmem:[%s1904_s5 + $0x70] sm:$0xff] (!%p1209_p6), %v1064_v1  ;;  %1121 = vst [vmem:[%s1904_s5 + $0x78] sm:$0xff] (!%p1209_p6), %v1065_v2 }
 0x354 PF: > { %s15_s18 = sadd.s32 1, %s1414_s18  }
 0x355   : > { %p12_p7 = scmp.ge.s32.totalorder %s15_s18, 5  }
 0x357   :  { %14 = sbr.rel (!%p12_p7) target bundleno = 1 (0x1), region = 84 }

</bundles_post_ra>
